<compile_context>
chip_gen: v7x
topology: tpu7x:2x2x1
jax: 0.10.0
libtpu: 0.0.40
codegen_flags: <defaults>
</compile_context>

<pallas_src>
import functools

import jax
import jax.numpy as jnp
from jax.experimental import pallas as pl
from jax.experimental.pallas import tpu as pltpu


D_MODEL = 48
NUM_HEADS = 6
HEAD_DIM = D_MODEL // NUM_HEADS   # 8


def _mha_kernel(x_ref, wqkv_ref, bqkv_ref, bias_ref, wo_ref, bo_ref, o_ref, *,
                batch, seq, d_model, num_heads):
    """Single-invocation MHA kernel.

    x_ref:    (R, D)      f32   flattened tokens, R = batch*seq
    wqkv_ref: (3D, D)     bf16  fused [Wq/8 ; Wk ; Wv]   (PyTorch (out, in) layout)
    bqkv_ref: (3D, 1)     f32   fused [bq/8 ; bk ; bv]
    bias_ref: (R, R)      f32   additive block-diagonal batch mask (0 / -1e30)
    wo_ref:   (H, hd, D)  bf16  output projection, split per head on leading axis
    bo_ref:   (1, D)      f32   output bias
    o_ref:    (R, D)      f32   output
    """
    hd = d_model // num_heads

    # ---- fused Q/K/V projection, produced transposed: (3D, R) -------------
    # One small 2-D transpose of x here buys sublane-aligned (free) per-head
    # slices below instead of 18 unaligned lane slices.
    x_t = x_ref[...].T.astype(jnp.bfloat16)                               # (D, R)
    qkv_t = jnp.dot(wqkv_ref[...], x_t,
                    preferred_element_type=jnp.float32) + bqkv_ref[...]   # (3D, R) f32

    # ---- head split: sublane-aligned row slices stacked on a leading axis --
    q = jnp.stack([qkv_t[h * hd:(h + 1) * hd, :].T                        # (R, hd)
                   for h in range(num_heads)], axis=0)                    # (H, R, hd)
    k = jnp.stack([qkv_t[d_model + h * hd: d_model + (h + 1) * hd, :]
                   for h in range(num_heads)], axis=0)                    # (H, hd, R)
    v = jnp.stack([qkv_t[2 * d_model + h * hd: 2 * d_model + (h + 1) * hd, :]
                   for h in range(num_heads)], axis=0)                    # (H, hd, R)

    # ---- scores for all heads in one batched einsum (f32) ------------------
    # The reference's exact `scores / 8` is folded into Wq/bq by prepare_params.
    s = jnp.einsum('hqd,hdk->hqk', q, k,
                   preferred_element_type=jnp.float32)                    # (H, R, R)
    # Tokens of all batches share the lane axis; kill cross-batch pairs with a
    # precomputed additive block-diagonal bias (broadcast over heads).
    s = s + bias_ref[...][None, :, :]

    # ---- ONE fused, numerically-stable softmax (strictly f32) --------------
    m = jnp.max(s, axis=-1, keepdims=True)
    e = jnp.exp(s - m)
    attn = e * pl.reciprocal(jnp.sum(e, axis=-1, keepdims=True), approx=True)

    # ---- context for all heads in one batched einsum (f32) -----------------
    ctx = jnp.einsum('hqk,hdk->hqd', attn, v,
                     preferred_element_type=jnp.float32)                  # (H, R, hd)

    # ---- output projection with the head-merge folded in -------------------
    # Per-head (R, hd) @ (hd, D) accumulate; Wo is indexed on its leading head
    # axis (free), so no lane-concat of head slivers is ever materialized.
    ctx_bf = ctx.astype(jnp.bfloat16)
    out = bo_ref[...] + jnp.dot(ctx_bf[0], wo_ref[0],
                                preferred_element_type=jnp.float32)       # (R, D)
    for h in range(1, num_heads):
        out = out + jnp.dot(ctx_bf[h], wo_ref[h],
                            preferred_element_type=jnp.float32)
    o_ref[...] = out.astype(o_ref.dtype)


def prepare_params(wq, bq, wk, bk, wv, bv, wo, bo, *, batch, seq):
    """One-time parameter prep (call once, reuse across forward calls).

    Folds the `scores / 8` into Wq/bq (power of two -> exact), fuses Q/K/V into
    one stacked (3D, D) weight in PyTorch (out, in) layout (the kernel consumes
    it transposed), splits Wo per head, and precomputes the additive
    block-diagonal batch mask.  Keeping this out of the jitted forward removes
    all per-call weight-prep XLA ops (perf review item #1).
    """
    d = wq.shape[0]
    hd = d // NUM_HEADS
    wqkv = jnp.concatenate([wq / 8.0, wk, wv], axis=0).astype(jnp.bfloat16)     # (3D, D)
    bqkv_t = jnp.concatenate(
        [(bq / 8.0).reshape(-1), bk.reshape(-1), bv.reshape(-1)],
        axis=0).reshape(-1, 1).astype(jnp.float32)                              # (3D, 1)
    wo_heads = wo.T.reshape(NUM_HEADS, hd, d).astype(jnp.bfloat16)              # (H, hd, D)
    bo_f = bo.reshape(1, d).astype(jnp.float32)                                 # (1, D)
    tok_batch = jnp.arange(batch * seq, dtype=jnp.int32) // seq
    same = tok_batch[:, None] == tok_batch[None, :]
    attn_bias = jnp.where(same, 0.0, -1e30).astype(jnp.float32)                 # (R, R)
    return wqkv, bqkv_t, attn_bias, wo_heads, bo_f


@jax.jit
def mha_forward(x, wqkv, bqkv_t, attn_bias, wo_heads, bo_f):
    """Jitted forward: only the pallas_call (+ free metadata reshapes) per call."""
    B, S, D = x.shape
    R = B * S
    H = wo_heads.shape[0]
    hd = D // H

    flops = (2 * R * D * 3 * D          # fused QKV projection
             + 2 * H * R * R * hd * 2   # scores + context
             + 2 * H * R * hd * D)      # output projection
    bytes_accessed = (x.size * 4 + wqkv.size * 2 + bqkv_t.size * 4
                      + attn_bias.size * 4 + wo_heads.size * 2 + bo_f.size * 4
                      + R * D * 4)
    cost = pl.CostEstimate(flops=flops, transcendentals=H * R * R,
                           bytes_accessed=bytes_accessed)

    vmem = pl.BlockSpec(memory_space=pltpu.MemorySpace.VMEM)
    kernel = functools.partial(_mha_kernel, batch=B, seq=S, d_model=D,
                               num_heads=H)
    out_flat = pl.pallas_call(
        kernel,
        out_shape=jax.ShapeDtypeStruct((R, D), jnp.float32),
        in_specs=[vmem] * 6,
        out_specs=vmem,
        cost_estimate=cost,
    )(x.reshape(R, D), wqkv, bqkv_t, attn_bias, wo_heads, bo_f)
    # TODO(synk): at real ViT sizes, add a row-tile grid over B*S with
    # dimension_semantics=("parallel",...) (2 TCs on v7x), re-derive tiles for
    # 64 MiB VMEM, emit bf16 lane-dense output, and replace the dense batch-mask
    # with per-batch grid indexing.
    return out_flat.reshape(B, S, D).astype(x.dtype)


def _reference(x, wq, bq, wk, bk, wv, bv, wo, bo):
    """Pure-JAX f32 reference mirroring the PyTorch forward."""
    B, S, D = x.shape
    q = x @ wq.T + bq
    k = x @ wk.T + bk
    v = x @ wv.T + bv

    def split(t):  # (B, S, D) -> (B, H, S, hd)
        return t.reshape(B, S, NUM_HEADS, HEAD_DIM).transpose(0, 2, 1, 3)

    q, k, v = split(q), split(k), split(v)
    scores = jnp.einsum("bhqd,bhkd->bhqk", q, k) / 8.0
    w = jax.nn.softmax(scores, axis=-1)
    out = jnp.einsum("bhqk,bhkd->bhqd", w, v)
    out = out.transpose(0, 2, 1, 3).reshape(B, S, D)
    return out @ wo.T + bo


if __name__ == "__main__":
    B, S = 2, 8
    key = jax.random.PRNGKey(0)
    keys = jax.random.split(key, 9)

    x = jax.random.normal(keys[0], (B, S, D_MODEL), dtype=jnp.float32)

    def lin_params(kw, kb):
        # deterministic, PyTorch-Linear-like scale
        bound = 1.0 / (D_MODEL ** 0.5)
        w = jax.random.uniform(kw, (D_MODEL, D_MODEL), jnp.float32, -bound, bound)
        b = jax.random.uniform(kb, (1, D_MODEL), jnp.float32, -bound, bound)
        return w, b

    wq, bq = lin_params(keys[1], keys[2])
    wk, bk = lin_params(keys[3], keys[4])
    wv, bv = lin_params(keys[5], keys[6])
    wo, bo = lin_params(keys[7], keys[8])

    # One-time prep, hoisted out of the per-call path (perf review item #1).
    params = jax.block_until_ready(
        prepare_params(wq, bq, wk, bk, wv, bv, wo, bo, batch=B, seq=S))

    out = jax.block_until_ready(mha_forward(x, *params))

    ref = _reference(x, wq, bq, wk, bk, wv, bv, wo, bo)
    assert out.shape == (B, S, D_MODEL)
    # bf16 projection operands + approx reciprocal -> loosened (but tight) tol
    assert jnp.allclose(out, ref, atol=3e-2, rtol=3e-2), "mismatch vs reference"

    print("KERNEL_OK")
</pallas_src>

<mosaic_0001>
module attributes {stable_mosaic.version = 11 : i64} {
  func.func @_mha_kernel(%arg0: memref<16x48xf32, #tpu.memory_space<vmem>>, %arg1: memref<144x48xbf16, #tpu.memory_space<vmem>>, %arg2: memref<144x1xf32, #tpu.memory_space<vmem>>, %arg3: memref<16x16xf32, #tpu.memory_space<vmem>>, %arg4: memref<6x8x48xbf16, #tpu.memory_space<vmem>>, %arg5: memref<1x48xf32, #tpu.memory_space<vmem>>, %arg6: memref<16x48xf32, #tpu.memory_space<vmem>>) attributes {dimension_semantics = [], scalar_prefetch = 0 : i64, scratch_operands = 0 : i64, tpu.core_type = #tpu.core_type<tc>} {
    %c0 = arith.constant 0 : index
    %c0_0 = arith.constant 0 : index
    %0 = vector.load %arg0[%c0, %c0_0] : memref<16x48xf32, #tpu.memory_space<vmem>>, vector<16x48xf32>
    %1 = tpu.transpose %0, [1, 0] : vector<16x48xf32> -> vector<48x16xf32>
    %2 = arith.truncf %1 : vector<48x16xf32> to vector<48x16xbf16>
    %c0_1 = arith.constant 0 : index
    %c0_2 = arith.constant 0 : index
    %3 = vector.load %arg1[%c0_1, %c0_2] : memref<144x48xbf16, #tpu.memory_space<vmem>>, vector<144x48xbf16>
    %cst = arith.constant dense<0.000000e+00> : vector<144x16xf32>
    %4 = tpu.matmul %3, %2, %cst {dimension_numbers = #tpu.dot_dimension_numbers<[1], [0], [0], [1], [0, 0, 1, 1], [], []>} : vector<144x48xbf16>, vector<48x16xbf16>, vector<144x16xf32> -> vector<144x16xf32>
    %c0_3 = arith.constant 0 : index
    %c0_4 = arith.constant 0 : index
    %5 = vector.load %arg2[%c0_3, %c0_4] : memref<144x1xf32, #tpu.memory_space<vmem>>, vector<144x1xf32>
    %6 = vector.broadcast %5 : vector<144x1xf32> to vector<144x16xf32>
    %7 = arith.addf %4, %6 : vector<144x16xf32>
    %8 = vector.extract_strided_slice %7 {offsets = [0, 0], sizes = [8, 16], strides = [1, 1]} : vector<144x16xf32> to vector<8x16xf32>
    %9 = tpu.transpose %8, [1, 0] : vector<8x16xf32> -> vector<16x8xf32>
    %10 = vector.extract_strided_slice %7 {offsets = [8, 0], sizes = [8, 16], strides = [1, 1]} : vector<144x16xf32> to vector<8x16xf32>
    %11 = tpu.transpose %10, [1, 0] : vector<8x16xf32> -> vector<16x8xf32>
    %12 = vector.extract_strided_slice %7 {offsets = [16, 0], sizes = [8, 16], strides = [1, 1]} : vector<144x16xf32> to vector<8x16xf32>
    %13 = tpu.transpose %12, [1, 0] : vector<8x16xf32> -> vector<16x8xf32>
    %14 = vector.extract_strided_slice %7 {offsets = [24, 0], sizes = [8, 16], strides = [1, 1]} : vector<144x16xf32> to vector<8x16xf32>
    %15 = tpu.transpose %14, [1, 0] : vector<8x16xf32> -> vector<16x8xf32>
    %16 = vector.extract_strided_slice %7 {offsets = [32, 0], sizes = [8, 16], strides = [1, 1]} : vector<144x16xf32> to vector<8x16xf32>
    %17 = tpu.transpose %16, [1, 0] : vector<8x16xf32> -> vector<16x8xf32>
    %18 = vector.extract_strided_slice %7 {offsets = [40, 0], sizes = [8, 16], strides = [1, 1]} : vector<144x16xf32> to vector<8x16xf32>
    %19 = tpu.transpose %18, [1, 0] : vector<8x16xf32> -> vector<16x8xf32>
    %20 = vector.shape_cast %9 : vector<16x8xf32> to vector<1x16x8xf32>
    %21 = vector.shape_cast %11 : vector<16x8xf32> to vector<1x16x8xf32>
    %22 = vector.shape_cast %13 : vector<16x8xf32> to vector<1x16x8xf32>
    %23 = vector.shape_cast %15 : vector<16x8xf32> to vector<1x16x8xf32>
    %24 = vector.shape_cast %17 : vector<16x8xf32> to vector<1x16x8xf32>
    %25 = vector.shape_cast %19 : vector<16x8xf32> to vector<1x16x8xf32>
    %26 = tpu.concatenate %20, %21, %22, %23, %24, %25 in 0 : vector<1x16x8xf32>, vector<1x16x8xf32>, vector<1x16x8xf32>, vector<1x16x8xf32>, vector<1x16x8xf32>, vector<1x16x8xf32> -> vector<6x16x8xf32>
    %27 = vector.extract_strided_slice %7 {offsets = [48, 0], sizes = [8, 16], strides = [1, 1]} : vector<144x16xf32> to vector<8x16xf32>
    %28 = vector.extract_strided_slice %7 {offsets = [56, 0], sizes = [8, 16], strides = [1, 1]} : vector<144x16xf32> to vector<8x16xf32>
    %29 = vector.extract_strided_slice %7 {offsets = [64, 0], sizes = [8, 16], strides = [1, 1]} : vector<144x16xf32> to vector<8x16xf32>
    %30 = vector.extract_strided_slice %7 {offsets = [72, 0], sizes = [8, 16], strides = [1, 1]} : vector<144x16xf32> to vector<8x16xf32>
    %31 = vector.extract_strided_slice %7 {offsets = [80, 0], sizes = [8, 16], strides = [1, 1]} : vector<144x16xf32> to vector<8x16xf32>
    %32 = vector.extract_strided_slice %7 {offsets = [88, 0], sizes = [8, 16], strides = [1, 1]} : vector<144x16xf32> to vector<8x16xf32>
    %33 = vector.shape_cast %27 : vector<8x16xf32> to vector<1x8x16xf32>
    %34 = vector.shape_cast %28 : vector<8x16xf32> to vector<1x8x16xf32>
    %35 = vector.shape_cast %29 : vector<8x16xf32> to vector<1x8x16xf32>
    %36 = vector.shape_cast %30 : vector<8x16xf32> to vector<1x8x16xf32>
    %37 = vector.shape_cast %31 : vector<8x16xf32> to vector<1x8x16xf32>
    %38 = vector.shape_cast %32 : vector<8x16xf32> to vector<1x8x16xf32>
    %39 = tpu.concatenate %33, %34, %35, %36, %37, %38 in 0 : vector<1x8x16xf32>, vector<1x8x16xf32>, vector<1x8x16xf32>, vector<1x8x16xf32>, vector<1x8x16xf32>, vector<1x8x16xf32> -> vector<6x8x16xf32>
    %40 = vector.extract_strided_slice %7 {offsets = [96, 0], sizes = [8, 16], strides = [1, 1]} : vector<144x16xf32> to vector<8x16xf32>
    %41 = vector.extract_strided_slice %7 {offsets = [104, 0], sizes = [8, 16], strides = [1, 1]} : vector<144x16xf32> to vector<8x16xf32>
    %42 = vector.extract_strided_slice %7 {offsets = [112, 0], sizes = [8, 16], strides = [1, 1]} : vector<144x16xf32> to vector<8x16xf32>
    %43 = vector.extract_strided_slice %7 {offsets = [120, 0], sizes = [8, 16], strides = [1, 1]} : vector<144x16xf32> to vector<8x16xf32>
    %44 = vector.extract_strided_slice %7 {offsets = [128, 0], sizes = [8, 16], strides = [1, 1]} : vector<144x16xf32> to vector<8x16xf32>
    %45 = vector.extract_strided_slice %7 {offsets = [136, 0], sizes = [8, 16], strides = [1, 1]} : vector<144x16xf32> to vector<8x16xf32>
    %46 = vector.shape_cast %40 : vector<8x16xf32> to vector<1x8x16xf32>
    %47 = vector.shape_cast %41 : vector<8x16xf32> to vector<1x8x16xf32>
    %48 = vector.shape_cast %42 : vector<8x16xf32> to vector<1x8x16xf32>
    %49 = vector.shape_cast %43 : vector<8x16xf32> to vector<1x8x16xf32>
    %50 = vector.shape_cast %44 : vector<8x16xf32> to vector<1x8x16xf32>
    %51 = vector.shape_cast %45 : vector<8x16xf32> to vector<1x8x16xf32>
    %52 = tpu.concatenate %46, %47, %48, %49, %50, %51 in 0 : vector<1x8x16xf32>, vector<1x8x16xf32>, vector<1x8x16xf32>, vector<1x8x16xf32>, vector<1x8x16xf32>, vector<1x8x16xf32> -> vector<6x8x16xf32>
    "tpu.trace_start"() <{level = 10 : i32, message = "hqd,hdk->hqk"}> : () -> ()
    %cst_5 = arith.constant dense<0.000000e+00> : vector<6x16x16xf32>
    %53 = tpu.matmul %26, %39, %cst_5 {dimension_numbers = #tpu.dot_dimension_numbers<[2], [1], [1], [2], [0, 0, 0, 1, 1, 2], [0], [0]>} : vector<6x16x8xf32>, vector<6x8x16xf32>, vector<6x16x16xf32> -> vector<6x16x16xf32>
    "tpu.trace_stop"() : () -> ()
    %c0_6 = arith.constant 0 : index
    %c0_7 = arith.constant 0 : index
    %54 = vector.load %arg3[%c0_6, %c0_7] : memref<16x16xf32, #tpu.memory_space<vmem>>, vector<16x16xf32>
    %55 = vector.shape_cast %54 : vector<16x16xf32> to vector<1x16x16xf32>
    %56 = vector.broadcast %55 : vector<1x16x16xf32> to vector<6x16x16xf32>
    %57 = arith.addf %53, %56 : vector<6x16x16xf32>
    %cst_8 = arith.constant dense<0xFF800000> : vector<6x16xf32>
    %58 = vector.multi_reduction <maximumf>, %57, %cst_8 [2] : vector<6x16x16xf32> to vector<6x16xf32>
    %59 = vector.shape_cast %58 : vector<6x16xf32> to vector<6x16x1xf32>
    %60 = vector.broadcast %59 : vector<6x16x1xf32> to vector<6x16x16xf32>
    %61 = arith.subf %57, %60 : vector<6x16x16xf32>
    %62 = math.exp %61 : vector<6x16x16xf32>
    %cst_9 = arith.constant dense<0.000000e+00> : vector<6x16xf32>
    %63 = vector.multi_reduction <add>, %62, %cst_9 [2] : vector<6x16x16xf32> to vector<6x16xf32>
    %64 = vector.shape_cast %63 : vector<6x16xf32> to vector<6x16x1xf32>
    %65 = tpu.reciprocal %64 {approx = true} : vector<6x16x1xf32> -> vector<6x16x1xf32>
    %66 = vector.broadcast %65 : vector<6x16x1xf32> to vector<6x16x16xf32>
    %67 = arith.mulf %62, %66 : vector<6x16x16xf32>
    "tpu.trace_start"() <{level = 10 : i32, message = "hqk,hdk->hqd"}> : () -> ()
    %cst_10 = arith.constant dense<0.000000e+00> : vector<6x16x8xf32>
    %68 = tpu.matmul %67, %52, %cst_10 {dimension_numbers = #tpu.dot_dimension_numbers<[2], [2], [1], [1], [0, 0, 0, 1, 1, 1], [0], [0]>} : vector<6x16x16xf32>, vector<6x8x16xf32>, vector<6x16x8xf32> -> vector<6x16x8xf32>
    "tpu.trace_stop"() : () -> ()
    %69 = arith.truncf %68 : vector<6x16x8xf32> to vector<6x16x8xbf16>
    %c0_11 = arith.constant 0 : index
    %c0_12 = arith.constant 0 : index
    %70 = vector.load %arg5[%c0_11, %c0_12] : memref<1x48xf32, #tpu.memory_space<vmem>>, vector<1x48xf32>
    %71 = vector.extract_strided_slice %69 {offsets = [0, 0, 0], sizes = [1, 16, 8], strides = [1, 1, 1]} : vector<6x16x8xbf16> to vector<1x16x8xbf16>
    %72 = vector.shape_cast %71 : vector<1x16x8xbf16> to vector<16x8xbf16>
    %c0_13 = arith.constant 0 : index
    %c0_14 = arith.constant 0 : index
    %c0_15 = arith.constant 0 : index
    %73 = vector.load %arg4[%c0_13, %c0_14, %c0_15] : memref<6x8x48xbf16, #tpu.memory_space<vmem>>, vector<1x8x48xbf16>
    %74 = vector.shape_cast %73 : vector<1x8x48xbf16> to vector<8x48xbf16>
    %cst_16 = arith.constant dense<0.000000e+00> : vector<16x48xf32>
    %75 = tpu.matmul %72, %74, %cst_16 {dimension_numbers = #tpu.dot_dimension_numbers<[1], [0], [0], [1], [0, 0, 1, 1], [], []>} : vector<16x8xbf16>, vector<8x48xbf16>, vector<16x48xf32> -> vector<16x48xf32>
    %76 = vector.broadcast %70 : vector<1x48xf32> to vector<16x48xf32>
    %77 = arith.addf %76, %75 : vector<16x48xf32>
    %78 = vector.extract_strided_slice %69 {offsets = [1, 0, 0], sizes = [1, 16, 8], strides = [1, 1, 1]} : vector<6x16x8xbf16> to vector<1x16x8xbf16>
    %79 = vector.shape_cast %78 : vector<1x16x8xbf16> to vector<16x8xbf16>
    %c1 = arith.constant 1 : index
    %c0_17 = arith.constant 0 : index
    %c0_18 = arith.constant 0 : index
    %80 = vector.load %arg4[%c1, %c0_17, %c0_18] : memref<6x8x48xbf16, #tpu.memory_space<vmem>>, vector<1x8x48xbf16>
    %81 = vector.shape_cast %80 : vector<1x8x48xbf16> to vector<8x48xbf16>
    %cst_19 = arith.constant dense<0.000000e+00> : vector<16x48xf32>
    %82 = tpu.matmul %79, %81, %cst_19 {dimension_numbers = #tpu.dot_dimension_numbers<[1], [0], [0], [1], [0, 0, 1, 1], [], []>} : vector<16x8xbf16>, vector<8x48xbf16>, vector<16x48xf32> -> vector<16x48xf32>
    %83 = arith.addf %77, %82 : vector<16x48xf32>
    %84 = vector.extract_strided_slice %69 {offsets = [2, 0, 0], sizes = [1, 16, 8], strides = [1, 1, 1]} : vector<6x16x8xbf16> to vector<1x16x8xbf16>
    %85 = vector.shape_cast %84 : vector<1x16x8xbf16> to vector<16x8xbf16>
    %c2 = arith.constant 2 : index
    %c0_20 = arith.constant 0 : index
    %c0_21 = arith.constant 0 : index
    %86 = vector.load %arg4[%c2, %c0_20, %c0_21] : memref<6x8x48xbf16, #tpu.memory_space<vmem>>, vector<1x8x48xbf16>
    %87 = vector.shape_cast %86 : vector<1x8x48xbf16> to vector<8x48xbf16>
    %cst_22 = arith.constant dense<0.000000e+00> : vector<16x48xf32>
    %88 = tpu.matmul %85, %87, %cst_22 {dimension_numbers = #tpu.dot_dimension_numbers<[1], [0], [0], [1], [0, 0, 1, 1], [], []>} : vector<16x8xbf16>, vector<8x48xbf16>, vector<16x48xf32> -> vector<16x48xf32>
    %89 = arith.addf %83, %88 : vector<16x48xf32>
    %90 = vector.extract_strided_slice %69 {offsets = [3, 0, 0], sizes = [1, 16, 8], strides = [1, 1, 1]} : vector<6x16x8xbf16> to vector<1x16x8xbf16>
    %91 = vector.shape_cast %90 : vector<1x16x8xbf16> to vector<16x8xbf16>
    %c3 = arith.constant 3 : index
    %c0_23 = arith.constant 0 : index
    %c0_24 = arith.constant 0 : index
    %92 = vector.load %arg4[%c3, %c0_23, %c0_24] : memref<6x8x48xbf16, #tpu.memory_space<vmem>>, vector<1x8x48xbf16>
    %93 = vector.shape_cast %92 : vector<1x8x48xbf16> to vector<8x48xbf16>
    %cst_25 = arith.constant dense<0.000000e+00> : vector<16x48xf32>
    %94 = tpu.matmul %91, %93, %cst_25 {dimension_numbers = #tpu.dot_dimension_numbers<[1], [0], [0], [1], [0, 0, 1, 1], [], []>} : vector<16x8xbf16>, vector<8x48xbf16>, vector<16x48xf32> -> vector<16x48xf32>
    %95 = arith.addf %89, %94 : vector<16x48xf32>
    %96 = vector.extract_strided_slice %69 {offsets = [4, 0, 0], sizes = [1, 16, 8], strides = [1, 1, 1]} : vector<6x16x8xbf16> to vector<1x16x8xbf16>
    %97 = vector.shape_cast %96 : vector<1x16x8xbf16> to vector<16x8xbf16>
    %c4 = arith.constant 4 : index
    %c0_26 = arith.constant 0 : index
    %c0_27 = arith.constant 0 : index
    %98 = vector.load %arg4[%c4, %c0_26, %c0_27] : memref<6x8x48xbf16, #tpu.memory_space<vmem>>, vector<1x8x48xbf16>
    %99 = vector.shape_cast %98 : vector<1x8x48xbf16> to vector<8x48xbf16>
    %cst_28 = arith.constant dense<0.000000e+00> : vector<16x48xf32>
    %100 = tpu.matmul %97, %99, %cst_28 {dimension_numbers = #tpu.dot_dimension_numbers<[1], [0], [0], [1], [0, 0, 1, 1], [], []>} : vector<16x8xbf16>, vector<8x48xbf16>, vector<16x48xf32> -> vector<16x48xf32>
    %101 = arith.addf %95, %100 : vector<16x48xf32>
    %102 = vector.extract_strided_slice %69 {offsets = [5, 0, 0], sizes = [1, 16, 8], strides = [1, 1, 1]} : vector<6x16x8xbf16> to vector<1x16x8xbf16>
    %103 = vector.shape_cast %102 : vector<1x16x8xbf16> to vector<16x8xbf16>
    %c5 = arith.constant 5 : index
    %c0_29 = arith.constant 0 : index
    %c0_30 = arith.constant 0 : index
    %104 = vector.load %arg4[%c5, %c0_29, %c0_30] : memref<6x8x48xbf16, #tpu.memory_space<vmem>>, vector<1x8x48xbf16>
    %105 = vector.shape_cast %104 : vector<1x8x48xbf16> to vector<8x48xbf16>
    %cst_31 = arith.constant dense<0.000000e+00> : vector<16x48xf32>
    %106 = tpu.matmul %103, %105, %cst_31 {dimension_numbers = #tpu.dot_dimension_numbers<[1], [0], [0], [1], [0, 0, 1, 1], [], []>} : vector<16x8xbf16>, vector<8x48xbf16>, vector<16x48xf32> -> vector<16x48xf32>
    %107 = arith.addf %101, %106 : vector<16x48xf32>
    %c0_32 = arith.constant 0 : index
    %c0_33 = arith.constant 0 : index
    %108 = vector.load %arg6[%c0_32, %c0_33] : memref<16x48xf32, #tpu.memory_space<vmem>>, vector<16x48xf32>
    tpu.vector_store %arg6[%c0_32, %c0_33], %107 {strides = array<i32>} : memref<16x48xf32, #tpu.memory_space<vmem>>, vector<16x48xf32>,
    return
  }
}

</mosaic_0001>

<bundles_post_ra>
// kernel: mha_forward.1
= control target key start
LH: loop header
LB: loop body
LE: loop exit
PB: predicated region body
PF: predicated region fallthrough
CT: control target
= control target key end

     0   :  { %v2388_v2 = vmov 0.0   ;;  %s2772_s0 = inlined_call_operand.vmem [shape: f32[16,48], index: 0, kind: input, shape index: {}]   ;;  %s2773_s1 = inlined_call_operand.vmem [shape: bf16[144,48], index: 1, kind: input, shape index: {}]   ;;  %s2774_s2 = inlined_call_operand.vmem [shape: f32[144,1], index: 2, kind: input, shape index: {}]   ;;  %s2775_s3 = inlined_call_operand.vmem [shape: f32[16,16], index: 3, kind: input, shape index: {}]   ;;  %s2776_s4 = inlined_call_operand.vmem [shape: bf16[6,8,48], index: 4, kind: input, shape index: {}]   ;;  %s2777_s5 = inlined_call_operand.vmem [shape: f32[1,48], index: 5, kind: input, shape index: {}]   ;;  %s2778_s6 = inlined_call_operand.hbm [shape: f32[16,48], index: 6, kind: output, shape index: {}]  }
   0x1   :  { %v25_v0 = vld [vmem:[%s2772_s0] sm:$0xff]  ;;  %v26_v1 = vld [vmem:[%s2772_s0 + $0x8] sm:$0xff]  ;;  %2141 = vmatprep.subr.bf16.mxu0 %v2388_v2 }
   0x2   :  { %27 = vxpose.xlu0.b32.start [1/2] (short) (narrow) %v25_v0, 48 }
   0x6   :  { %28 = vxpose.xlu0.b32.end [2/2] (short) (narrow) %v26_v1, 48 }
   0x7   :  { %11 = vsyncpa [#allocation3], 0  ;;  %vm2389_vm0 = vmmov 0   ;;  %v80_v3 = vld [vmem:[%s2774_s2] sm:$0xff]  ;;  %v2390_v4 = vmov 0   ;;  %v81_v5 = vld [vmem:[%s2774_s2 + $0x8] sm:$0xff] }
   0x8   :  { %2147 = vmatprep.mubr.msk.bf16.mxu0 %vm2389_vm0, %v2388_v2  ;;  %2305 = vset.pattern.permute.xlu1 %v2390_v4  ;;  %v82_v6 = vld [vmem:[%s2774_s2 + $0x10] sm:$0xff]  ;;  %v83_v7 = vld [vmem:[%s2774_s2 + $0x18] sm:$0xff]  ;;  %v84_v10 = vld [vmem:[%s2774_s2 + $0x20] sm:$0xff]  ;;  %vm233_vm1 = vcmask 392192   ;;  %vm560_vm2 = vcmask 64512   ;;  %vm1047_vm3 = vcmask 130048  }
   0x9   :  { %100 = vperm.xlu1 %2305, %v80_v3   ;;  %v86_v8 = vld [vmem:[%s2774_s2 + $0x30] sm:$0xff]  ;;  %v87_v9 = vld [vmem:[%s2774_s2 + $0x38] sm:$0xff]  ;;  %v88_v11 = vld [vmem:[%s2774_s2 + $0x40] sm:$0xff]  ;;  %vm1695_vm4 = vcmask 1043456   ;;  %s2391_s18 = smov [#allocation2]  }
   0xa   :  { %v85_v12 = vld [vmem:[%s2774_s2 + $0x28] sm:$0xff]  ;;  %v2307_v23 = vld [vmem:[%s2773_s1] sm:$0xff]   ;;  %v2309_v25 = vld [vmem:[%s2773_s1 + $0x10] sm:$0xff]  }
   0xb   :  { %v89_v13 = vld [vmem:[%s2774_s2 + $0x48] sm:$0xff]  ;;  %v2310_v26 = vld [vmem:[%s2773_s1 + $0x18] sm:$0xff]   ;;  %v2311_v27 = vld [vmem:[%s2773_s1 + $0x20] sm:$0xff]  }
   0xc   :  { %v2308_v24 = vld [vmem:[%s2773_s1 + $0x8] sm:$0xff]   ;;  %v90_v59 = vld [vmem:[%s2774_s2 + $0x50] sm:$0xff]  ;;  %v91_v1 = vld [vmem:[%s2774_s2 + $0x58] sm:$0xff] }
   0xd   :  { %105 = vperm.xlu1 %2305, %v81_v5   ;;  %v2312_v28 = vld [vmem:[%s2773_s1 + $0x28] sm:$0xff]  }
  0x11   :  { %115 = vperm.xlu1 %2305, %v83_v7  }
  0x15   :  { %130 = vperm.xlu1 %2305, %v86_v8  }
  0x19   :  { %135 = vperm.xlu1 %2305, %v87_v9  }
  0x1d   :  { %120 = vperm.xlu1 %2305, %v84_v10  }
  0x21   :  { %140 = vperm.xlu1 %2305, %v88_v11  }
  0x25   :  { %125 = vperm.xlu1 %2305, %v85_v12  }
  0x29   :  { %145 = vperm.xlu1 %2305, %v89_v13  }
  0x2f   :  { %2306 = vset.pattern.permute.xlu0 %v2390_v4 }
  0x3f   :  { %110 = vperm.xlu0 %2306, %v82_v6  }
  0x82   :  { %v43_v14 = vpop.trf.xlu0 }
  0x86   :  { %v44_v15 = vpop.trf.xlu0 }
  0x87   :  { %v59_v16 = vpack.c.bf16 %v44_v15, %v43_v14 }
  0x88   :  { %v101_v29 = vpop.permute.xlu1 %100 }
  0x89   :  { %2142 = vmatpush3.bf16.msra.mxu0 %v59_v16 }
  0x8a   :  { %v45_v17 = vpop.trf.xlu0  ;;  %2143 = vmatprep.subr.bf16.mxu0 %v2388_v2 }
  0x8c   :  { %v106_v33 = vpop.permute.xlu1 %105 }
  0x8e   :  { %v46_v18 = vpop.trf.xlu0 }
  0x8f   :  { %v60_v19 = vpack.c.bf16 %v46_v18, %v45_v17 }
  0x90   :  { %v116_v43 = vpop.permute.xlu1 %115 }
  0x91   :  { %2144 = vmatpush3.bf16.msra.mxu0 %v60_v19 }
  0x92   :  { %v47_v20 = vpop.trf.xlu0  ;;  %2145 = vmatprep.subr.bf16.mxu0 %v2388_v2 }
  0x94   :  { %v131_v48 = vpop.permute.xlu1 %130 }
  0x96   :  { %v48_v21 = vpop.trf.xlu0 }
  0x97   :  { %v61_v22 = vpack.c.bf16 %v48_v21, %v47_v20 }
  0x98   :  { %v136_v52 = vpop.permute.xlu1 %135 }
  0x99   :  { %2146 = vmatpush3.bf16.msra.mxu0 %v61_v22 }
  0x9a   :  { %2243 = vmatprep.subr.bf16.mxu0 %v2388_v2 }
  0x9c   :  { %2148 = vmatmul.mubr.msk.bf16.vlgmr.msra.gmra.mrb[0].mxu0 %vm233_vm1, %v2307_v23  ;;  %v121_v3 = vpop.permute.xlu1 %120 }
  0x9d   :  { %2151 = vmatprep.mubr.msk.bf16.mxu0 %vm2389_vm0, %v2388_v2 }
  0xa0   :  { %v141_v4 = vpop.permute.xlu1 %140 }
  0xa4   :  { %2152 = vmatmul.mubr.msk.bf16.gmra.mrb[4].mxu0 %vm233_vm1, %v2308_v24  ;;  %v126_v6 = vpop.permute.xlu1 %125 }
  0xa5   :  { %2155 = vmatprep.mubr.msk.bf16.mxu0 %vm2389_vm0, %v2388_v2 }
  0xa8   :  { %v146_v9 = vpop.permute.xlu1 %145 }
  0xac   :  { %2156 = vmatmul.mubr.msk.bf16.gmra.mrb[8].mxu0 %vm233_vm1, %v2309_v25 }
  0xad   :  { %2159 = vmatprep.mubr.msk.bf16.mxu0 %vm2389_vm0, %v2388_v2 }
  0xb4   :  { %2160 = vmatmul.mubr.msk.bf16.gmra.mrb[12].mxu0 %vm233_vm1, %v2310_v26 }
  0xb5   :  { %2163 = vmatprep.mubr.msk.bf16.mxu0 %vm2389_vm0, %v2388_v2 }
  0xbc   :  { %2164 = vmatmul.mubr.msk.bf16.gmra.mrb[16].mxu0 %vm233_vm1, %v2311_v27 }
  0xbd   :  { %2167 = vmatprep.mubr.msk.bf16.mxu0 %vm2389_vm0, %v2388_v2 }
  0xbe   :  { %v111_v37 = vpop.permute.xlu0 %110 }
  0xc4   :  { %2168 = vmatmul.mubr.msk.bf16.gmra.mrb[20].mxu0 %vm233_vm1, %v2312_v28  ;;  %v2313_v28 = vld [vmem:[%s2773_s1 + $0x30] sm:$0xff]  }
  0xc5   :  { %2171 = vmatprep.mubr.msk.bf16.mxu0 %vm2389_vm0, %v2388_v2 }
  0xcc   :  { %2172 = vmatmul.mubr.msk.bf16.gmra.mrb[24].mxu0 %vm233_vm1, %v2313_v28 }
  0xcd   :  { %2175 = vmatprep.mubr.msk.bf16.mxu0 %vm2389_vm0, %v2388_v2 }
 0x16f   :  { %v295_v30 = vpop.f32.mrb[0].mxu0 }
 0x170   :  { %v296_v31 = vadd.f32 %v295_v30, %v101_v29  ;;  %v2149_v32 = vpop.f32.mrb[1].mxu0  ;;  %v2314_v29 = vld [vmem:[%s2773_s1 + $0x38] sm:$0xff]   ;;  %v559_v30 = vld [vmem:[%s2775_s3 + $0x8] sm:$0xff] }
 0x171   :  { %v298_v34 = vpop.f32.mrb[2].mxu0  ;;  %2176 = vmatmul.mubr.msk.bf16.gmra.mrb[28].mxu0 %vm233_vm1, %v2314_v29 }
 0x172   :  { %v299_v35 = vadd.f32 %v298_v34, %v106_v33  ;;  %366 = vxpose.xlu1.b32.start.end [1/1] (short) (narrow) %v296_v31, 16  ;;  %v2150_v36 = vpop.f32.mrb[3].mxu0  ;;  %2179 = vmatprep.mubr.msk.bf16.mxu0 %vm2389_vm0, %v2388_v2  ;;  %v558_v31 = vld [vmem:[%s2775_s3] sm:$0xff]  ;;  %s2010_s3 = sshll.u32 %s2391_s18, 4  ;;  %s2011_s3 = int_to_ptr.vmem [resolvable:$true] %s2010_s3 }
 0x173   :  { %s2364_s19 = scalar_lea.vmem %s2011_s3, 256  ;;  %p2369_p1 = scmp.lt.s32.totalorder %s2011_s3, %s2011_s3 }
 0x174   :  { %398 = vxpose.xlu0.b32.start.end [1/1] (short) (narrow) %v299_v35, 16  ;;  %p2365_p0 = scmp.ne.s32.totalorder %s2011_s3, %s2364_s19  ;;  %p2370_p2 = scmp.lt.s32.totalorder %s2364_s19, %s2364_s19 }
 0x176   :  { %p2371_p3 = por %p2370_p2, %p2369_p1 }
 0x177   :  { %v303_v38 = vpop.f32.mrb[4].mxu0 }
 0x178   :  { %v304_v39 = vadd.f32 %v303_v38, %v111_v37  ;;  %v2153_v40 = vpop.f32.mrb[5].mxu0  ;;  %p2372_p4 = pnand %p2371_p3, %p2365_p0 }
 0x179   :  { %v306_v41 = vpop.f32.mrb[6].mxu0 }
 0x17a   :  { %v2154_v42 = vpop.f32.mrb[7].mxu0  ;;  %430 = vxpose.xlu0.b32.start.end [1/1] (short) (narrow) %v304_v39, 16  ;;  %v307_v5 = vadd.f32 %v306_v41, %v116_v43 }
 0x17f   :  { %v311_v44 = vpop.f32.mrb[8].mxu0 }
 0x180   :  { %v2157_v45 = vpop.f32.mrb[9].mxu0  ;;  %v312_v8 = vadd.f32 %v311_v44, %v121_v3 }
 0x181   :  { %v314_v46 = vpop.f32.mrb[10].mxu0 }
 0x182   :  { %v2158_v47 = vpop.f32.mrb[11].mxu0  ;;  %v315_v7 = vadd.f32 %v314_v46, %v126_v6 }
 0x187   :  { %v319_v49 = vpop.f32.mrb[12].mxu0 }
 0x188   :  { %v320_v50 = vadd.f32 %v319_v49, %v131_v48  ;;  %v2161_v51 = vpop.f32.mrb[13].mxu0 }
 0x189   :  { %v322_v53 = vpop.f32.mrb[14].mxu0 }
 0x18a   :  { %v323_v54 = vadd.f32 %v322_v53, %v136_v52  ;;  %2183 = vmatprep.subr.mxu1 %v320_v50  ;;  %v2162_v55 = vpop.f32.mrb[15].mxu0 }
 0x18b   :  { %2184 = vmatpush3.msra.mxu1 %v320_v50 }
 0x18c   :  { %2188 = vmatprep.subr.mxu1 %v323_v54 }
 0x18f   :  { %v327_v56 = vpop.f32.mrb[16].mxu0 }
 0x190   :  { %v2165_v57 = vpop.f32.mrb[17].mxu0  ;;  %v328_v13 = vadd.f32 %v327_v56, %v141_v4 }
 0x191   :  { %v330_v58 = vpop.f32.mrb[18].mxu0 }
 0x192   :  { %v2166_v60 = vpop.f32.mrb[19].mxu0  ;;  %v331_v15 = vadd.f32 %v330_v58, %v146_v9 }
 0x194   :  { %150 = vperm.xlu1 %2305, %v90_v59  }
 0x197   :  { %v335_v61 = vpop.f32.mrb[20].mxu0 }
 0x198   :  { %v2169_v62 = vpop.f32.mrb[21].mxu0 }
 0x199   :  { %v338_v63 = vpop.f32.mrb[22].mxu0 }
 0x19a   :  { %v2170_v0 = vpop.f32.mrb[23].mxu0 }
 0x19b   :  { %v93_v0 = vld [vmem:[%s2774_s2 + $0x68] sm:$0xff] }
 0x19f   :  { %v2577_v3 = vpop.f32.mrb[24].mxu0 }
 0x1a0   :  { %v2173_v4 = vpop.f32.mrb[25].mxu0 }
 0x1a7   :  { %155 = vperm.xlu0 %2306, %v91_v1   ;;  %v2315_v1 = vld [vmem:[%s2773_s1 + $0x40] sm:$0xff]  }
 0x1a8   :  { %2180 = vmatmul.mubr.msk.bf16.gmra.mrb[32].mxu0 %vm233_vm1, %v2315_v1 }
 0x1a9   :  { %2245 = vmatprep.mubr.msk.bf16.mxu0 %vm2389_vm0, %v2388_v2 }
 0x1bd   :  { %462 = vxpose.xlu1.b32.start.end [1/1] (short) (narrow) %v307_v5, 16  ;;  %v2582_v5 = vpop.f32.mrb[26].mxu0 }
 0x1be   :  { %v2174_v6 = vpop.f32.mrb[27].mxu0 }
 0x1c2   :  { %526 = vxpose.xlu1.b32.start.end [1/1] (short) (narrow) %v315_v7, 16  ;;  %v92_v7 = vld [vmem:[%s2774_s2 + $0x60] sm:$0xff] }
 0x1c5   :  { %494 = vxpose.xlu0.b32.start.end [1/1] (short) (narrow) %v312_v8, 16 }
 0x1f2   :  { %v382_v10 = vpop.trf.xlu1 }
 0x1f3   :  { %2185 = vmatprep.mubr.msk.f32.mxu1 %vm560_vm2, %v382_v10 }
 0x1f4   :  { %v414_v11 = vpop.trf.xlu0 }
 0x1f6   :  { %v383_v12 = vpop.trf.xlu1 }
 0x1f7   :  { %2186 = vmatmul.mubr.msk.f32.vlgmr.msra.gmra.mrb[0].mxu1 %vm560_vm2, %v383_v12 }
 0x1f8   :  { %2189 = vmatpush3.msra.mxu1 %v323_v54  ;;  %v415_v14 = vpop.trf.xlu0  ;;  %2190 = vmatprep.mubr.msk.f32.mxu1 %vm560_vm2, %v414_v11 }
 0x1f9   :  { %2193 = vmatprep.subr.mxu1 %v328_v13 }
 0x1fb   :  { %2191 = vmatmul.mubr.msk.f32.vlgmr.msra.gmra.mrb[2].mxu1 %vm560_vm2, %v415_v14 }
 0x1fc   :  { %2194 = vmatpush3.msra.mxu1 %v328_v13  ;;  %v446_v16 = vpop.trf.xlu0 }
 0x1fd   :  { %2198 = vmatprep.subr.mxu1 %v331_v15  ;;  %2195 = vmatprep.mubr.msk.f32.mxu1 %vm560_vm2, %v446_v16 }
 0x200   :  { %v447_v17 = vpop.trf.xlu0 }
 0x201   :  { %2196 = vmatmul.mubr.msk.f32.vlgmr.msra.gmra.mrb[4].mxu1 %vm560_vm2, %v447_v17 }
 0x202   :  { %2199 = vmatpush3.msra.mxu1 %v331_v15 }
 0x213   :  { %v151_v18 = vpop.permute.xlu1 %150 }
 0x214   :  { %v336_v19 = vadd.f32 %v335_v61, %v151_v18 }
 0x216   :  { %2203 = vmatprep.subr.mxu1 %v336_v19 }
 0x226   :  { %v156_v21 = vpop.permute.xlu0 %155 }
 0x227   :  { %v339_v23 = vadd.f32 %v338_v63, %v156_v21 }
 0x23d   :  { %v478_v20 = vpop.trf.xlu1 }
 0x23e   :  { %2200 = vmatprep.mubr.msk.f32.mxu1 %vm560_vm2, %v478_v20 }
 0x241   :  { %v479_v22 = vpop.trf.xlu1 }
 0x242   :  { %2201 = vmatmul.mubr.msk.f32.vlgmr.msra.gmra.mrb[6].mxu1 %vm560_vm2, %v479_v22 }
 0x243   :  { %2204 = vmatpush3.msra.mxu1 %v336_v19 }
 0x244   :  { %2208 = vmatprep.subr.mxu1 %v339_v23 }
 0x245   :  { %v510_v24 = vpop.trf.xlu0  ;;  %v542_v25 = vpop.trf.xlu1 }
 0x246   :  { %2205 = vmatprep.mubr.msk.f32.mxu1 %vm560_vm2, %v510_v24 }
 0x249   :  { %v511_v26 = vpop.trf.xlu0  ;;  %v543_v27 = vpop.trf.xlu1 }
 0x24a   :  { %2206 = vmatmul.mubr.msk.f32.vlgmr.msra.gmra.mrb[8].mxu1 %vm560_vm2, %v511_v26 }
 0x24b   :  { %2209 = vmatpush3.msra.mxu1 %v339_v23  ;;  %2210 = vmatprep.mubr.msk.f32.mxu1 %vm560_vm2, %v542_v25 }
 0x24e   :  { %2211 = vmatmul.mubr.msk.f32.vlgmr.msra.gmra.mrb[10].mxu1 %vm560_vm2, %v543_v27 }
 0x2ca   :  { %v2187_v32 = vpop.f32.mrb[0].mxu1 }
 0x2cb   :  { %v639_v33 = vadd.f32 %v2187_v32, %v559_v30  ;;  %v633_v34 = vpop.f32.mrb[1].mxu1  ;;  %v95_v32 = vld [vmem:[%s2774_s2 + $0x78] sm:$0xff] }
 0x2cc   :  { %v634_v35 = vadd.f32 %v633_v34, %v558_v31 }
 0x2cd   :  { %v1051_v36 = vsel %vm1047_vm3, %v639_v33, -inf }
 0x2ce   :  { %1052 = vmax.xlane.f32.xlu0 %v1051_v36  ;;  %v1048_v37 = vsel %vm1047_vm3, %v634_v35, -inf  ;;  %v2192_v38 = vpop.f32.mrb[2].mxu1 }
 0x2cf   :  { %1049 = vmax.xlane.f32.xlu1 %v1048_v37  ;;  %v720_v39 = vadd.f32 %v2192_v38, %v559_v30  ;;  %v714_v40 = vpop.f32.mrb[3].mxu1  ;;  %v94_v37 = vld [vmem:[%s2774_s2 + $0x70] sm:$0xff] }
 0x2d0   :  { %v715_v41 = vadd.f32 %v714_v40, %v558_v31 }
 0x2d1   :  { %v1057_v42 = vsel %vm1047_vm3, %v720_v39, -inf }
 0x2d2   :  { %v1054_v43 = vsel %vm1047_vm3, %v715_v41, -inf }
 0x2d3   :  { %1058 = vmax.xlane.f32.xlu1 %v1057_v42 }
 0x2d4   :  { %v2197_v44 = vpop.f32.mrb[4].mxu1 }
 0x2d5   :  { %v2547_v45 = vadd.f32 %v2197_v44, %v559_v30  ;;  %v795_v46 = vpop.f32.mrb[5].mxu1 }
 0x2d6   :  { %v2551_v48 = vadd.f32 %v795_v46, %v558_v31 }
 0x2d7   :  { %1055 = vmax.xlane.f32.xlu1 %v1054_v43  ;;  %v1063_v47 = vsel %vm1047_vm3, %v2547_v45, -inf }
 0x2d8   :  { %v1060_v49 = vsel %vm1047_vm3, %v2551_v48, -inf }
 0x2db   :  { %1064 = vmax.xlane.f32.xlu1 %v1063_v47 }
 0x2df   :  { %1061 = vmax.xlane.f32.xlu1 %v1060_v49 }
 0x315   :  { %v2202_v50 = vpop.f32.mrb[6].mxu1 }
 0x316   :  { %v2555_v51 = vadd.f32 %v2202_v50, %v559_v30  ;;  %v876_v52 = vpop.f32.mrb[7].mxu1 }
 0x317   :  { %v2557_v53 = vadd.f32 %v876_v52, %v558_v31 }
 0x318   :  { %v1069_v54 = vsel %vm1047_vm3, %v2555_v51, -inf }
 0x319   :  { %1070 = vmax.xlane.f32.xlu1 %v1069_v54  ;;  %v1066_v55 = vsel %vm1047_vm3, %v2557_v53, -inf }
 0x31d   :  { %1067 = vmax.xlane.f32.xlu1 %v1066_v55  ;;  %v2207_v56 = vpop.f32.mrb[8].mxu1 }
 0x31e   :  { %v2563_v57 = vadd.f32 %v2207_v56, %v559_v30  ;;  %v957_v58 = vpop.f32.mrb[9].mxu1 }
 0x31f   :  { %v2565_v59 = vadd.f32 %v957_v58, %v558_v31 }
 0x320   :  { %v1075_v60 = vsel %vm1047_vm3, %v2563_v57, -inf }
 0x321   :  { %1076 = vmax.xlane.f32.xlu1 %v1075_v60  ;;  %v1072_v61 = vsel %vm1047_vm3, %v2565_v59, -inf  ;;  %v2212_v62 = vpop.f32.mrb[10].mxu1 }
 0x322   :  { %1073 = vmax.xlane.f32.xlu0 %v1072_v61  ;;  %v1038_v63 = vpop.f32.mrb[11].mxu1  ;;  %v2587_v8 = vadd.f32 %v2212_v62, %v559_v30 }
 0x323   :  { %v2589_v9 = vadd.f32 %v1038_v63, %v558_v31 }
 0x324   :  { %v1081_v10 = vsel %vm1047_vm3, %v2587_v8, -inf }
 0x325   :  { %v1078_v11 = vsel %vm1047_vm3, %v2589_v9, -inf }
 0x332   :  { %165 = vperm.xlu1 %2305, %v93_v0  }
 0x338   :  { %160 = vperm.xlu0 %2306, %v92_v7  }
 0x356   :  { %1082 = vmax.xlane.f32.xlu1 %v1081_v10 }
 0x357   :  { %1079 = vmax.xlane.f32.xlu0 %v1078_v11 }
 0x35b   :  { %v1053_v12 = vpop.xlane.xlu0 %1052 }
 0x35c   :  { %v1085_v13 = vsub.f32 %v639_v33, %v1053_v12  ;;  %v1050_v14 = vpop.xlane.xlu1 %1049  ;;  %v2614_v33 = vpop.f32.mrb[28].mxu0 }
 0x35d   :  { %v1084_v15 = vsub.f32 %v634_v35, %v1050_v14  ;;  %v2177_v34 = vpop.f32.mrb[29].mxu0 }
 0x35e   :  { %v1098_v16 = vmul.f32 1.442695, %v1085_v13  ;;  %v2616_v35 = vpop.f32.mrb[30].mxu0 }
 0x35f   :  { %v1096_v17 = vmul.f32 1.442695, %v1084_v15  ;;  %v2178_v36 = vpop.f32.mrb[31].mxu0 }
 0x360   :  { %2316 = vpow2.f32 %v1098_v16  ;;  %v1059_v18 = vpop.xlane.xlu1 %1058 }
 0x361   :  { %2318 = vpow2.f32 %v1096_v17  ;;  %v1087_v19 = vsub.f32 %v720_v39, %v1059_v18 }
 0x363   :  { %v1102_v20 = vmul.f32 1.442695, %v1087_v19 }
 0x364   :  { %v1056_v21 = vpop.xlane.xlu1 %1055 }
 0x365   :  { %2320 = vpow2.f32 %v1102_v20  ;;  %v1086_v22 = vsub.f32 %v715_v41, %v1056_v21 }
 0x367   :  { %v1100_v23 = vmul.f32 1.442695, %v1086_v22 }
 0x368   :  { %v1065_v38 = vpop.xlane.xlu1 %1064 }
 0x369   :  { %2322 = vpow2.f32 %v1100_v23  ;;  %v1089_v39 = vsub.f32 %v2547_v45, %v1065_v38  ;;  %v97_v23 = vld [vmem:[%s2774_s2 + $0x88] sm:$0xff]  ;;  %v96_v38 = vld [vmem:[%s2774_s2 + $0x80] sm:$0xff] }
 0x36a   :  { %v2595_v24 = vpop.eup %2316 }
 0x36b   :  { %v2597_v25 = vpop.eup %2318  ;;  %v1123_v26 = vsel %vm1047_vm3, %v2595_v24, 0.0  ;;  %v1106_v41 = vmul.f32 1.442695, %v1089_v39 }
 0x36c   :  { %1124 = vadd.xlane.f32.xlu1 %v1123_v26  ;;  %v1120_v27 = vsel %vm1047_vm3, %v2597_v25, 0.0  ;;  %v1062_v40 = vpop.xlane.xlu1 %1061 }
 0x36d   :  { %1121 = vadd.xlane.f32.xlu0 %v1120_v27  ;;  %v1088_v42 = vsub.f32 %v2551_v48, %v1062_v40  ;;  %2324 = vpow2.f32 %v1106_v41  ;;  %v2669_v27 = vpop.f32.mrb[32].mxu0 }
 0x36f   :  { %v2603_v28 = vpop.eup %2320  ;;  %v1104_v43 = vmul.f32 1.442695, %v1088_v42 }
 0x370   :  { %v1129_v29 = vsel %vm1047_vm3, %v2603_v28, 0.0 }
 0x371   :  { %1130 = vadd.xlane.f32.xlu1 %v1129_v29  ;;  %2326 = vpow2.f32 %v1104_v43 }
 0x373   :  { %v2607_v30 = vpop.eup %2322 }
 0x374   :  { %v1126_v31 = vsel %vm1047_vm3, %v2607_v30, 0.0 }
 0x375   :  { %1127 = vadd.xlane.f32.xlu0 %v1126_v31  ;;  %v2181_v31 = vpop.f32.mrb[33].mxu0 }
 0x376   :  { %v362_v34 = vpop.f32.mrb[34].mxu0 }
 0x377   :  { %v2623_v44 = vpop.eup %2324 }
 0x378   :  { %v1135_v46 = vsel %vm1047_vm3, %v2623_v44, 0.0 }
 0x37b   :  { %v2627_v47 = vpop.eup %2326 }
 0x37c   :  { %v1132_v45 = vsel %vm1047_vm3, %v2627_v47, 0.0 }
 0x382   :  { %175 = vperm.xlu1 %2305, %v95_v32  }
 0x38b   :  { %170 = vperm.xlu0 %2306, %v94_v37   ;;  %v2182_v37 = vpop.f32.mrb[35].mxu0 }
 0x3a6   :  { %v1071_v49 = vpop.xlane.xlu1 %1070  ;;  %1136 = vadd.xlane.f32.xlu1 %v1135_v46 }
 0x3a7   :  { %v1091_v50 = vsub.f32 %v2555_v51, %v1071_v49 }
 0x3a9   :  { %v1110_v52 = vmul.f32 1.442695, %v1091_v50 }
 0x3aa   :  { %v1068_v54 = vpop.xlane.xlu1 %1067  ;;  %1133 = vadd.xlane.f32.xlu1 %v1132_v45 }
 0x3ab   :  { %2328 = vpow2.f32 %v1110_v52  ;;  %v1090_v48 = vsub.f32 %v2557_v53, %v1068_v54 }
 0x3ad   :  { %v1108_v55 = vmul.f32 1.442695, %v1090_v48 }
 0x3ae   :  { %v1077_v56 = vpop.xlane.xlu1 %1076 }
 0x3af   :  { %2330 = vpow2.f32 %v1108_v55  ;;  %v1093_v58 = vsub.f32 %v2563_v57, %v1077_v56  ;;  %v1074_v60 = vpop.xlane.xlu0 %1073 }
 0x3b0   :  { %v1092_v61 = vsub.f32 %v2565_v59, %v1074_v60 }
 0x3b1   :  { %v1114_v62 = vmul.f32 1.442695, %v1093_v58 }
 0x3b2   :  { %v1112_v63 = vmul.f32 1.442695, %v1092_v61  ;;  %v166_v1 = vpop.permute.xlu1 %165  ;;  %v1691_v61 = vld [vmem:[%s2776_s4] sm:$0xf] }
 0x3b3   :  { %2332 = vpow2.f32 %v1114_v62  ;;  %v347_v57 = vadd.f32 %v2582_v5, %v166_v1  ;;  %v1697_v62 = vsel %vm1695_vm4, %v1691_v61, 0 }
 0x3b4   :  { %2334 = vpow2.f32 %v1112_v63  ;;  %2244 = vmatpush3.bf16.msra.mxu0 %v1697_v62 }
 0x3b5   :  { %v2635_v51 = vpop.eup %2328 }
 0x3b6   :  { %v1141_v0 = vsel %vm1047_vm3, %v2635_v51, 0.0 }
 0x3b7   :  { %1142 = vadd.xlane.f32.xlu1 %v1141_v0  ;;  %v161_v53 = vpop.permute.xlu0 %160 }
 0x3b8   :  { %v344_v4 = vadd.f32 %v2577_v3, %v161_v53 }
 0x3b9   :  { %v2640_v6 = vpop.eup %2330 }
 0x3ba   :  { %2213 = vmatprep.subr.msk.mxu1 %vm1047_vm3, %v344_v4  ;;  %v1138_v59 = vsel %vm1047_vm3, %v2640_v6, 0.0 }
 0x3bb   :  { %1139 = vadd.xlane.f32.xlu0 %v1138_v59  ;;  %2214 = vmatpush3.xpose.msk.msra.mxu1 %vm1047_vm3, %v344_v4 }
 0x3bc   :  { %2218 = vmatprep.subr.msk.mxu1 %vm1047_vm3, %v347_v57 }
 0x3bd   :  { %v2648_v7 = vpop.eup %2332 }
 0x3be   :  { %v1147_v10 = vsel %vm1047_vm3, %v2648_v7, 0.0  ;;  %v2652_v3 = vpop.eup %2334 }
 0x3bf   :  { %1148 = vadd.xlane.f32.xlu1 %v1147_v10  ;;  %v1144_v5 = vsel %vm1047_vm3, %v2652_v3, 0.0 }
 0x3c3   :  { %1145 = vadd.xlane.f32.xlu1 %v1144_v5  ;;  %v2071_v5 = vld [vmem:[%s2776_s4 + $0x4] sm:$0xf] }
 0x3e3   :  { %v1083_v11 = vpop.xlane.xlu1 %1082 }
 0x3e4   :  { %v1095_v12 = vsub.f32 %v2587_v8, %v1083_v11  ;;  %v1080_v13 = vpop.xlane.xlu0 %1079 }
 0x3e5   :  { %v1094_v14 = vsub.f32 %v2589_v9, %v1080_v13 }
 0x3e6   :  { %v1118_v15 = vmul.f32 1.442695, %v1095_v12 }
 0x3e7   :  { %v1116_v16 = vmul.f32 1.442695, %v1094_v14 }
 0x3e8   :  { %2336 = vpow2.f32 %v1118_v15  ;;  %v2073_v15 = vld [vmem:[%s2776_s4 + $0x8] sm:$0xf] }
 0x3e9   :  { %2338 = vpow2.f32 %v1116_v16 }
 0x3f2   :  { %v2658_v17 = vpop.eup %2336 }
 0x3f3   :  { %v2660_v18 = vpop.eup %2338  ;;  %v1153_v19 = vsel %vm1047_vm3, %v2658_v17, 0.0 }
 0x3f4   :  { %1154 = vadd.xlane.f32.xlu1 %v1153_v19  ;;  %v1150_v20 = vsel %vm1047_vm3, %v2660_v18, 0.0  ;;  %v1805_v19 = vsel %vm1695_vm4, %v2073_v15, 0 }
 0x3f5   :  { %1151 = vadd.xlane.f32.xlu0 %v1150_v20  ;;  %v2075_v20 = vld [vmem:[%s2776_s4 + $0xc] sm:$0xf] }
 0x3f9   :  { %v1125_v8 = vpop.xlane.xlu1 %1124 }
 0x3fa   :  { %2340 = vrcp.f32 %v1125_v8  ;;  %v1122_v21 = vpop.xlane.xlu0 %1121 }
 0x3fb   :  { %2342 = vrcp.f32 %v1122_v21 }
 0x3fe   :  { %v1131_v9 = vpop.xlane.xlu1 %1130 }
 0x3ff   :  { %2344 = vrcp.f32 %v1131_v9 }
 0x402   :  { %v1128_v22 = vpop.xlane.xlu0 %1127 }
 0x403   :  { %2346 = vrcp.f32 %v1128_v22  ;;  %v1856_v22 = vsel %vm1695_vm4, %v2075_v20, 0 }
 0x404   :  { %v2341_v26 = vpop.eup %2340 }
 0x405   :  { %v2343_v29 = vpop.eup %2342  ;;  %185 = vperm.xlu1 %2305, %v97_v23   ;;  %v1169_v36 = vmul.f32 %v2341_v26, %v2595_v24  ;;  %v176_v24 = vpop.permute.xlu1 %175  ;;  %v2077_v23 = vld [vmem:[%s2776_s4 + $0x10] sm:$0xf] }
 0x406   :  { %v1168_v32 = vmul.f32 %v2343_v29, %v2597_v25  ;;  %v355_v46 = vadd.f32 %v2616_v35, %v176_v24  ;;  %v1907_v31 = vsel %vm1695_vm4, %v2077_v23, 0 }
 0x408   :  { %2215 = vmatprep.mubr.msk.f32.mxu1 %vm1047_vm3, %v1168_v32  ;;  %v2079_v32 = vld [vmem:[%s2776_s4 + $0x14] sm:$0xf] }
 0x409   :  { %2216 = vmatmul.mubr.msk.f32.vlgmr.msra.gmra.mrb[12].mxu1 %vm1047_vm3, %v1169_v36  ;;  %v2345_v41 = vpop.eup %2344 }
 0x40a   :  { %2219 = vmatpush3.xpose.msk.msra.mxu1 %vm1047_vm3, %v347_v57  ;;  %v171_v39 = vpop.permute.xlu0 %170  ;;  %v1171_v43 = vmul.f32 %v2345_v41, %v2603_v28 }
 0x40b   :  { %v352_v40 = vadd.f32 %v2614_v33, %v171_v39  ;;  %180 = vperm.xlu0 %2306, %v96_v38   ;;  %v1958_v38 = vsel %vm1695_vm4, %v2079_v32, 0 }
 0x40d   :  { %v2347_v25 = vpop.eup %2346  ;;  %2223 = vmatprep.subr.msk.mxu1 %vm1047_vm3, %v352_v40 }
 0x40e   :  { %v1170_v42 = vmul.f32 %v2347_v25, %v2607_v30 }
 0x410   :  { %2220 = vmatprep.mubr.msk.f32.mxu1 %vm1047_vm3, %v1170_v42 }
 0x411   :  { %2221 = vmatmul.mubr.msk.f32.vlgmr.msra.gmra.mrb[14].mxu1 %vm1047_vm3, %v1171_v43 }
 0x412   :  { %2224 = vmatpush3.xpose.msk.msra.mxu1 %vm1047_vm3, %v352_v40 }
 0x413   :  { %2228 = vmatprep.subr.msk.mxu1 %vm1047_vm3, %v355_v46 }
 0x433   :  { %v1137_v33 = vpop.xlane.xlu1 %1136 }
 0x434   :  { %2348 = vrcp.f32 %v1137_v33 }
 0x437   :  { %v1134_v49 = vpop.xlane.xlu1 %1133 }
 0x438   :  { %2350 = vrcp.f32 %v1134_v49 }
 0x43e   :  { %v2349_v50 = vpop.eup %2348 }
 0x43f   :  { %v1173_v28 = vmul.f32 %v2349_v50, %v2623_v44 }
 0x442   :  { %v2351_v52 = vpop.eup %2350 }
 0x443   :  { %v1172_v30 = vmul.f32 %v2351_v52, %v2627_v47 }
 0x444   :  { %v1143_v45 = vpop.xlane.xlu1 %1142 }
 0x445   :  { %2225 = vmatprep.mubr.msk.f32.mxu1 %vm1047_vm3, %v1172_v30  ;;  %2352 = vrcp.f32 %v1143_v45 }
 0x446   :  { %2226 = vmatmul.mubr.msk.f32.vlgmr.msra.gmra.mrb[16].mxu1 %vm1047_vm3, %v1173_v28 }
 0x447   :  { %2229 = vmatpush3.xpose.msk.msra.mxu1 %vm1047_vm3, %v355_v46  ;;  %v2070_v46 = vld [vmem:[%s2777_s5] ss:$0 sm:$0xff] }
 0x448   :  { %v1140_v35 = vpop.xlane.xlu0 %1139 }
 0x449   :  { %2354 = vrcp.f32 %v1140_v35 }
 0x44c   :  { %v1149_v54 = vpop.xlane.xlu1 %1148 }
 0x44f   :  { %v2353_v55 = vpop.eup %2352 }
 0x450   :  { %v1146_v48 = vpop.xlane.xlu1 %1145  ;;  %v1175_v47 = vmul.f32 %v2353_v55, %v2635_v51 }
 0x451   :  { %2356 = vrcp.f32 %v1146_v48 }
 0x452   :  { %2358 = vrcp.f32 %v1149_v54 }
 0x453   :  { %v2355_v56 = vpop.eup %2354 }
 0x454   :  { %v1174_v58 = vmul.f32 %v2355_v56, %v2640_v6 }
 0x456   :  { %2230 = vmatprep.mubr.msk.f32.mxu1 %vm1047_vm3, %v1174_v58 }
 0x457   :  { %2231 = vmatmul.mubr.msk.f32.vlgmr.msra.gmra.mrb[18].mxu1 %vm1047_vm3, %v1175_v47 }
 0x45b   :  { %v2357_v44 = vpop.eup %2356 }
 0x45c   :  { %v1176_v60 = vmul.f32 %v2357_v44, %v2652_v3  ;;  %v2359_v4 = vpop.eup %2358 }
 0x45d   :  { %v1177_v59 = vmul.f32 %v2359_v4, %v2648_v7  ;;  %v1754_v7 = vsel %vm1695_vm4, %v2071_v5, 0 }
 0x45e   :  { %2235 = vmatprep.mubr.msk.f32.mxu1 %vm1047_vm3, %v1176_v60 }
 0x481   :  { %v1155_v51 = vpop.xlane.xlu1 %1154 }
 0x482   :  { %v1152_v63 = vpop.xlane.xlu0 %1151 }
 0x483   :  { %2360 = vrcp.f32 %v1152_v63 }
 0x484   :  { %2362 = vrcp.f32 %v1155_v51 }
 0x485   :  { %v186_v0 = vpop.permute.xlu1 %185 }
 0x486   :  { %v363_v57 = vadd.f32 %v362_v34, %v186_v0 }
 0x48a   :  { %v181_v1 = vpop.permute.xlu0 %180 }
 0x48b   :  { %v360_v53 = vadd.f32 %v2669_v27, %v181_v1 }
 0x48d   :  { %v2361_v6 = vpop.eup %2360  ;;  %2233 = vmatprep.subr.msk.mxu1 %vm1047_vm3, %v360_v53 }
 0x48e   :  { %2234 = vmatpush3.xpose.msk.msra.mxu1 %vm1047_vm3, %v360_v53  ;;  %v2363_v10 = vpop.eup %2362  ;;  %v1178_v3 = vmul.f32 %v2361_v6, %v2660_v18 }
 0x48f   :  { %2238 = vmatprep.subr.msk.mxu1 %vm1047_vm3, %v363_v57  ;;  %v1179_v11 = vmul.f32 %v2363_v10, %v2658_v17 }
 0x491   :  { %2236 = vmatmul.mubr.msk.f32.vlgmr.msra.gmra.mrb[20].mxu1 %vm1047_vm3, %v1177_v59 }
 0x492   :  { %2239 = vmatpush3.xpose.msk.msra.mxu1 %vm1047_vm3, %v363_v57  ;;  %2240 = vmatprep.mubr.msk.f32.mxu1 %vm1047_vm3, %v1178_v3 }
 0x493   :  { %2249 = vmatprep.subr.bf16.mxu1 %v2388_v2 }
 0x495   :  { %2241 = vmatmul.mubr.msk.f32.vlgmr.msra.gmra.mrb[22].mxu1 %vm1047_vm3, %v1179_v11 }
 0x496   :  { %2250 = vmatpush3.bf16.msra.mxu1 %v1754_v7  ;;  %2251 = vmatprep.mubr.msk.bf16.mxu1 %vm2389_vm0, %v2388_v2 }
 0x497   :  { %2255 = vmatprep.subr.bf16.mxu1 %v2388_v2 }
 0x4dc   :  { %v2217_v12 = vpop.f32.mrb[12].mxu1 }
 0x4dd   :  { %v1255_v13 = vpop.f32.mrb[13].mxu1 }
 0x4de   :  { %v1684_v14 = vpack.c.bf16 %v2217_v12, %v1255_v13 }
 0x4e0   :  { %2246 = vmatmul.mubr.msk.bf16.vlgmr.msra.gmra.mrb[36].mxu0 %vm560_vm2, %v1684_v14 }
 0x4e4   :  { %v2222_v16 = vpop.f32.mrb[14].mxu1 }
 0x4e5   :  { %v1339_v17 = vpop.f32.mrb[15].mxu1 }
 0x4e6   :  { %v1685_v18 = vpack.c.bf16 %v2222_v16, %v1339_v17 }
 0x4e8   :  { %2252 = vmatmul.mubr.msk.bf16.vlgmr.msra.gmra.mrb[24].mxu1 %vm560_vm2, %v1685_v18 }
 0x4e9   :  { %2256 = vmatpush3.bf16.msra.mxu1 %v1805_v19  ;;  %2257 = vmatprep.mubr.msk.bf16.mxu1 %vm2389_vm0, %v2388_v2 }
 0x4ea   :  { %2261 = vmatprep.subr.bf16.mxu1 %v2388_v2 }
 0x519   :  { %v2227_v8 = vpop.f32.mrb[16].mxu1 }
 0x51a   :  { %v1423_v21 = vpop.f32.mrb[17].mxu1 }
 0x51b   :  { %v1686_v9 = vpack.c.bf16 %v2227_v8, %v1423_v21 }
 0x51d   :  { %2258 = vmatmul.mubr.msk.bf16.vlgmr.msra.gmra.mrb[24].mxu1 %vm560_vm2, %v1686_v9 }
 0x51e   :  { %2262 = vmatpush3.bf16.msra.mxu1 %v1856_v22  ;;  %2263 = vmatprep.mubr.msk.bf16.mxu1 %vm2389_vm0, %v2388_v2 }
 0x51f   :  { %2267 = vmatprep.subr.bf16.mxu1 %v2388_v2 }
 0x52a   :  { %v2232_v26 = vpop.f32.mrb[18].mxu1 }
 0x52b   :  { %v1507_v27 = vpop.f32.mrb[19].mxu1 }
 0x52c   :  { %v1687_v29 = vpack.c.bf16 %v2232_v26, %v1507_v27 }
 0x52e   :  { %2264 = vmatmul.mubr.msk.bf16.vlgmr.msra.gmra.mrb[24].mxu1 %vm560_vm2, %v1687_v29 }
 0x52f   :  { %2268 = vmatpush3.bf16.msra.mxu1 %v1907_v31  ;;  %2269 = vmatprep.mubr.msk.bf16.mxu1 %vm2389_vm0, %v2388_v2 }
 0x530   :  { %2273 = vmatprep.subr.bf16.mxu1 %v2388_v2 }
 0x564   :  { %v2237_v34 = vpop.f32.mrb[20].mxu1 }
 0x565   :  { %v1591_v36 = vpop.f32.mrb[21].mxu1 }
 0x566   :  { %v1688_v37 = vpack.c.bf16 %v2237_v34, %v1591_v36 }
 0x568   :  { %v2242_v39 = vpop.f32.mrb[22].mxu1  ;;  %2270 = vmatmul.mubr.msk.bf16.vlgmr.msra.gmra.mrb[24].mxu1 %vm560_vm2, %v1688_v37 }
 0x569   :  { %v1675_v40 = vpop.f32.mrb[23].mxu1  ;;  %2274 = vmatpush3.bf16.msra.mxu1 %v1958_v38  ;;  %2275 = vmatprep.mubr.msk.bf16.mxu1 %vm2389_vm0, %v2388_v2 }
 0x56a   :  { %v1689_v41 = vpack.c.bf16 %v2242_v39, %v1675_v40 }
 0x574   :  { %2276 = vmatmul.mubr.msk.bf16.vlgmr.msra.gmra.mrb[24].mxu1 %vm560_vm2, %v1689_v41 }
 0x5b3   :  { %v1733_v25 = vpop.f32.mrb[36].mxu0 }
 0x5b4   :  { %v2247_v24 = vpop.f32.mrb[37].mxu0  ;;  %v1746_v33 = vadd.f32 %v2070_v46, %v1733_v25 }
 0x5b5   :  { %v1736_v42 = vpop.f32.mrb[38].mxu0 }
 0x5b6   :  { %v2248_v43 = vpop.f32.mrb[39].mxu0  ;;  %v1747_v50 = vadd.f32 %v2070_v46, %v1736_v42 }
 0x647   :  { %v1994_v49 = vpop.f32.mrb[24].mxu1 }
 0x648   :  { %v2280_v52 = vadd.f32 %v1994_v49, %v1746_v33  ;;  %v2277_v30 = vpop.f32.mrb[25].mxu1 }
 0x649   :  { %v1997_v28 = vpop.f32.mrb[26].mxu1 }
 0x64a   :  { %2003 = vst.msk [vmem:[#allocation2] sm:$0xff] %vm233_vm1, %v2280_v52  ;;  %v2282_v2 = vadd.f32 %v1997_v28, %v1747_v50  ;;  %v2278_v45 = vpop.f32.mrb[27].mxu1 }
 0x64c   :  { %2004 = vst.msk [vmem:[#allocation2 + $0x8] sm:$0xff] %vm233_vm1, %v2282_v2 }
 0x64d   :  { %2375 = shalt.err (!%p2372_p4)
}
 0x64e   :  { %s2376_s21 = scalar_lea.hbm %s2778_s6, 256 }
 0x64f   :  { %p2377_p5 = scmp.ne.s32.totalorder %s2778_s6, %s2376_s21  ;;  %p2380_p6 = scmp.lt.u32.totalorder %s2376_s21, %s2778_s6 }
 0x651   :  { %p2382_p7 = pnand %p2380_p6, %p2377_p5 }
 0x653   :  { %2385 = shalt.err (!%p2382_p7)
}
 0x654   :  { %s2392_s25 = smov 128   ;;  %s2393_s26 = smov 8  }
 0x655   :  { %2016 = dma.vmem_to_hbm [thread:$0]  %s2011_s3, 256, %s2778_s6, [#allocation3], %s2392_s25, %s2392_s25, %s2393_s26  }
 0x656   :  { %2386 = dma.done.wait [#allocation3], 256  }
 0x657   :  { %2387 = vsyncadd [#allocation3], 4294967040 }
 0x658   :  { %2020 = vsyncpa [#allocation3], 1 }

</bundles_post_ra>
